<compile_context>
chip_gen: v7x
topology: tpu7x:2x2x1
jax: 0.10.0
libtpu: 0.0.40
codegen_flags: <defaults>
</compile_context>

<pallas_src>
import functools

import jax
import jax.numpy as jnp
from jax.experimental import pallas as pl
from jax.experimental.pallas import tpu as pltpu


def _round_up(x, m):
    return (x + m - 1) // m * m


def _default_compute_dtype():
    """bf16 compute on v6e/v7x (bf16-capable VPU/EUP); f32 elsewhere (v5e...)."""
    try:
        kind = jax.devices()[0].device_kind.lower()
    except Exception:
        return jnp.float32
    if "v6" in kind or "v7" in kind:
        return jnp.bfloat16
    return jnp.float32


def _moe_kernel(coord_ref, p_ref, o_ref, *, K, compute_dtype):
    # coord_ref : (2, T)   row 0 = x coordinate, row 1 = y coordinate (lanes = pixels)
    # p_ref     : (TN, P)  packed per-row mixture parameters:
    #             [mu_x(K) | mu_y(K) | w(K) | q00(K) | q01(K) | q11(K) | 0-pad]
    #             q** already contain the -0.5 / alpha^2 / cross-term factors.
    # o_ref     : (TN, T)
    tn, hw_t = o_ref.shape
    cdt = compute_dtype

    coords = coord_ref[...]                                  # (2, T)
    params = p_ref[...]                                      # (TN, P)

    # Hoist the (1,T)->(TN,T) sublane broadcast out of the K loop
    # (JAX does not CSE broadcast_in_dim).
    gx = jnp.broadcast_to(coords[0:1, :], (tn, hw_t)).astype(cdt)
    gy = jnp.broadcast_to(coords[1:2, :], (tn, hw_t)).astype(cdt)

    num = jnp.zeros((tn, hw_t), jnp.float32)
    den = jnp.zeros((tn, hw_t), jnp.float32)

    # K is a small static constant -> unrolled at trace time.  If K ever grows
    # past ~8, switch to lax.fori_loop(unroll=2..4) to limit vreg pressure.
    for k in range(K):
        mux = params[:, k:k + 1].astype(cdt)                 # (TN, 1)
        muy = params[:, K + k:K + k + 1].astype(cdt)
        wgt = params[:, 2 * K + k:2 * K + k + 1]             # f32 (accumulation)
        q00 = params[:, 3 * K + k:3 * K + k + 1].astype(cdt)
        q01 = params[:, 4 * K + k:4 * K + k + 1].astype(cdt)
        q11 = params[:, 5 * K + k:5 * K + k + 1].astype(cdt)

        dx = gx - mux                                        # (TN, T)
        dy = gy - muy
        # Horner form of q00*dx^2 + q01*dx*dy + q11*dy^2 (coefficients already
        # include the -0.5 / alpha factors).
        arg = dx * (q00 * dx + q01 * dy) + (q11 * dy) * dy
        e = jnp.exp(arg).astype(jnp.float32)                 # EUP (binding unit)
        num = num + e * wgt
        den = den + e

    den = jnp.maximum(jnp.float32(1e-07), den)
    # EUP approx reciprocal (nearly free slot) + one VPU Newton step -> ~f32
    # accuracy with no full-precision divide per pixel.
    r = pl.reciprocal(den, approx=True)
    r = r * (2.0 - den * r)
    o_ref[...] = jnp.clip(num * r, 0.0, 1.0)


def moe_forward_pallas(height, width, params, *, in_channels=3, kernel=4,
                       sharpening_factor=1.0, compute_dtype=None):
    """Pallas equivalent of MoE.forward(height, width, params)."""
    K = kernel
    alpha = float(sharpening_factor)
    if compute_dtype is None:
        compute_dtype = _default_compute_dtype()

    B, ch, _ = params.shape
    N = B * ch
    HW = height * width

    # ---- tile sizes --------------------------------------------------------
    TN = 16 if N >= 16 else 8                     # rows (batch*channels) / step
    N_pad = _round_up(N, TN)
    ni = N_pad // TN

    HW128 = _round_up(HW, 128)
    MAX_LANES = 32768                             # 16x32768x4 B x 2 bufs ~ 4 MiB VMEM
    nj = pl.cdiv(HW128, MAX_LANES)
    # v7x has two TensorCores: keep >= 2 grid steps so ("parallel","parallel")
    # can shard across them (harmless on single-TC v5e/v6e).
    if ni * nj < 2 and HW128 >= 256:
        nj = 2
    HW_TILE = _round_up(pl.cdiv(HW128, nj), 128)
    HW_pad = HW_TILE * nj

    # ---- pixel coordinates, exactly as torch.meshgrid(xx, yy, 'ij') --------
    xx = jnp.linspace(0.0, 1.0, width, dtype=jnp.float32)
    yy = jnp.linspace(0.0, 1.0, height, dtype=jnp.float32)
    gxm, gym = jnp.meshgrid(xx, yy, indexing="ij")                    # (W, H)
    coords = jnp.stack([gxm.reshape(-1), gym.reshape(-1)], axis=0)    # (2, HW)
    coords = jnp.pad(coords, ((0, 0), (0, HW_pad - HW)))

    # ---- pack parameters; fold alpha / -0.5 / cross factor into q** --------
    p = params.astype(jnp.float32).reshape(N, -1)
    mu_x = p[:, :K]
    mu_y = p[:, K:2 * K]
    w = p[:, 2 * K:3 * K]
    Sig = p[:, 3 * K:3 * K + 4 * K].reshape(N, K, 2, 2)
    a = alpha * Sig[:, :, 0, 0]     # lower-tri entries (tril zeroes Sigma[0,1])
    b = alpha * Sig[:, :, 1, 0]
    c = alpha * Sig[:, :, 1, 1]
    q00 = -0.5 * a * a
    q01 = -(a * b)
    q11 = -0.5 * (b * b + c * c)
    packed = jnp.concatenate([mu_x, mu_y, w, q00, q01, q11], axis=1)  # (N, 6K)
    P = max(128, _round_up(6 * K, 128))
    packed = jnp.pad(packed, ((0, N_pad - N), (0, P - 6 * K)))

    kernel_fn = functools.partial(_moe_kernel, K=K, compute_dtype=compute_dtype)

    # Advisory only; reflects the coordinate-resident grid order.
    cost = pl.CostEstimate(
        flops=int(11 * K * N_pad * HW_pad + 6 * N_pad * HW_pad),
        transcendentals=int(K * N_pad * HW_pad + N_pad * HW_pad),
        bytes_accessed=int(2 * HW_pad * 4 + nj * N_pad * P * 4 + N_pad * HW_pad * 4),
    )

    out = pl.pallas_call(
        kernel_fn,
        out_shape=jax.ShapeDtypeStruct((N_pad, HW_pad), jnp.float32),
        # Pixel tiles outer, rows innermost: the coordinate block index (0, j)
        # is unchanged across consecutive steps -> pipeliner keeps it resident.
        grid=(nj, ni),
        in_specs=[
            pl.BlockSpec((2, HW_TILE), lambda j, i: (0, j)),   # packed gx/gy
            pl.BlockSpec((TN, P), lambda j, i: (i, 0)),        # packed params
        ],
        out_specs=pl.BlockSpec((TN, HW_TILE), lambda j, i: (i, j)),
        compiler_params=pltpu.CompilerParams(
            dimension_semantics=("parallel", "parallel")),
        cost_estimate=cost,
    )(coords, packed)

    out = out[:N, :HW]
    # same as torch: y_hat.view(-1, ch, height, width)  -> NCHW
    return out.reshape(-1, ch, height, width)


def moe_forward_ref(height, width, params, *, in_channels=3, kernel=4,
                    sharpening_factor=1.0):
    """Pure-JAX reference mirroring the PyTorch forward exactly."""
    K = kernel
    xx = jnp.linspace(0.0, 1.0, width, dtype=jnp.float32)
    yy = jnp.linspace(0.0, 1.0, height, dtype=jnp.float32)
    gxm, gym = jnp.meshgrid(xx, yy, indexing='ij')
    grid = jnp.stack((gxm, gym), 2).reshape(height * width, 2)

    p = params.astype(jnp.float32)
    mu_x = p[:, :, :K].reshape(-1, K, 1)
    mu_y = p[:, :, K:2 * K].reshape(-1, K, 1)
    mu = jnp.concatenate((mu_x, mu_y), 2)
    Sigma = p[:, :, 3 * K:3 * K + K * 4].reshape(-1, K, 2, 2)
    w = p[:, :, 2 * K:3 * K].reshape(-1, K)
    Sigma = jnp.tril(Sigma) * sharpening_factor
    mu = mu[:, :, None, :]
    x = jnp.tile(grid[None, None], (mu.shape[0], mu.shape[1], 1, 1))
    d = (x - mu)[..., None]
    quad = jnp.einsum('abcli,ablm,abnm,abcnj->abc', d, Sigma, Sigma, d)
    e = jnp.exp(-0.5 * quad)
    g = jnp.sum(e, axis=1, keepdims=True)
    g_max = jnp.maximum(1e-07, g)
    e_norm = e / g_max
    y = jnp.sum(e_norm * w[..., None], axis=1)
    y = jnp.clip(y, 0.0, 1.0)
    return y.reshape(-1, in_channels, height, width)


if __name__ == "__main__":
    # Module defaults: in_channels=3, kernel (num mixtures)=4, alpha=1.
    B, CH, K = 2, 3, 4
    H, W = 16, 16
    # params last dim must cover 3*K (mu_x, mu_y, w) + 4*K (Sigma) = 7*K = 28.
    key = jax.random.PRNGKey(0)
    params = jax.random.normal(key, (B, CH, 7 * K), dtype=jnp.float32) * 0.5

    y_ref = moe_forward_ref(H, W, params, in_channels=CH, kernel=K,
                            sharpening_factor=1.0)

    # Exact (f32-compute) path: tight tolerance on every chip generation.
    y32 = moe_forward_pallas(H, W, params, in_channels=CH, kernel=K,
                             sharpening_factor=1.0, compute_dtype=jnp.float32)
    y32 = jax.block_until_ready(y32)
    assert y32.shape == (B, CH, H, W), y32.shape
    assert jnp.allclose(y32, y_ref, atol=1e-4, rtol=1e-4), \
        float(jnp.max(jnp.abs(y32 - y_ref)))

    # Auto path: bf16 quad/exp on v6e/v7x (looser tolerance), f32 elsewhere.
    y = moe_forward_pallas(H, W, params, in_channels=CH, kernel=K,
                           sharpening_factor=1.0)
    y = jax.block_until_ready(y)
    assert y.shape == (B, CH, H, W), y.shape
    loose = _default_compute_dtype() == jnp.bfloat16
    tol = 7e-2 if loose else 1e-4
    assert jnp.allclose(y, y_ref, atol=tol, rtol=tol), \
        float(jnp.max(jnp.abs(y - y_ref)))

    print("KERNEL_OK")
</pallas_src>

<mosaic_0001>
module attributes {stable_mosaic.version = 11 : i64} {
  func.func @_moe_kernel(%arg0: i32, %arg1: i32, %arg2: memref<2x128xf32, #tpu.memory_space<vmem>>, %arg3: memref<8x128xf32, #tpu.memory_space<vmem>>, %arg4: memref<8x128xf32, #tpu.memory_space<vmem>>) attributes {dimension_semantics = [#tpu.dimension_semantics<parallel>, #tpu.dimension_semantics<parallel>], iteration_bounds = array<i64: 2, 1>, scalar_prefetch = 0 : i64, scratch_operands = 0 : i64, tpu.core_type = #tpu.core_type<tc>, window_params = [{transform_indices = @transform_0, window_bounds = array<i64: 2, 128>}, {transform_indices = @transform_1, window_bounds = array<i64: 8, 128>}, {transform_indices = @transform_2, window_bounds = array<i64: 8, 128>}]} {
    %c0 = arith.constant 0 : index
    %c0_0 = arith.constant 0 : index
    %0 = vector.load %arg2[%c0, %c0_0] : memref<2x128xf32, #tpu.memory_space<vmem>>, vector<2x128xf32>
    %c0_1 = arith.constant 0 : index
    %c0_2 = arith.constant 0 : index
    %1 = vector.load %arg3[%c0_1, %c0_2] : memref<8x128xf32, #tpu.memory_space<vmem>>, vector<8x128xf32>
    %2 = vector.extract_strided_slice %0 {offsets = [0, 0], sizes = [1, 128], strides = [1, 1]} : vector<2x128xf32> to vector<1x128xf32>
    %3 = vector.shape_cast %2 : vector<1x128xf32> to vector<1x128xf32>
    %4 = vector.broadcast %3 : vector<1x128xf32> to vector<8x128xf32>
    %5 = vector.extract_strided_slice %0 {offsets = [1, 0], sizes = [1, 128], strides = [1, 1]} : vector<2x128xf32> to vector<1x128xf32>
    %6 = vector.shape_cast %5 : vector<1x128xf32> to vector<1x128xf32>
    %7 = vector.broadcast %6 : vector<1x128xf32> to vector<8x128xf32>
    %cst = arith.constant 0.000000e+00 : f32
    %8 = vector.broadcast %cst : f32 to vector<8x128xf32>
    %cst_3 = arith.constant 0.000000e+00 : f32
    %9 = vector.broadcast %cst_3 : f32 to vector<8x128xf32>
    %10 = vector.extract_strided_slice %1 {offsets = [0, 0], sizes = [8, 1], strides = [1, 1]} : vector<8x128xf32> to vector<8x1xf32>
    %11 = vector.extract_strided_slice %1 {offsets = [0, 4], sizes = [8, 1], strides = [1, 1]} : vector<8x128xf32> to vector<8x1xf32>
    %12 = vector.extract_strided_slice %1 {offsets = [0, 8], sizes = [8, 1], strides = [1, 1]} : vector<8x128xf32> to vector<8x1xf32>
    %13 = vector.extract_strided_slice %1 {offsets = [0, 12], sizes = [8, 1], strides = [1, 1]} : vector<8x128xf32> to vector<8x1xf32>
    %14 = vector.extract_strided_slice %1 {offsets = [0, 16], sizes = [8, 1], strides = [1, 1]} : vector<8x128xf32> to vector<8x1xf32>
    %15 = vector.extract_strided_slice %1 {offsets = [0, 20], sizes = [8, 1], strides = [1, 1]} : vector<8x128xf32> to vector<8x1xf32>
    %16 = vector.broadcast %10 : vector<8x1xf32> to vector<8x128xf32>
    %17 = arith.subf %4, %16 : vector<8x128xf32>
    %18 = vector.broadcast %11 : vector<8x1xf32> to vector<8x128xf32>
    %19 = arith.subf %7, %18 : vector<8x128xf32>
    %20 = vector.broadcast %13 : vector<8x1xf32> to vector<8x128xf32>
    %21 = arith.mulf %20, %17 : vector<8x128xf32>
    %22 = vector.broadcast %14 : vector<8x1xf32> to vector<8x128xf32>
    %23 = arith.mulf %22, %19 : vector<8x128xf32>
    %24 = arith.addf %21, %23 : vector<8x128xf32>
    %25 = arith.mulf %17, %24 : vector<8x128xf32>
    %26 = vector.broadcast %15 : vector<8x1xf32> to vector<8x128xf32>
    %27 = arith.mulf %26, %19 : vector<8x128xf32>
    %28 = arith.mulf %27, %19 : vector<8x128xf32>
    %29 = arith.addf %25, %28 : vector<8x128xf32>
    %30 = math.exp %29 : vector<8x128xf32>
    %31 = vector.broadcast %12 : vector<8x1xf32> to vector<8x128xf32>
    %32 = arith.mulf %30, %31 : vector<8x128xf32>
    %33 = arith.addf %8, %32 : vector<8x128xf32>
    %34 = arith.addf %9, %30 : vector<8x128xf32>
    %35 = vector.extract_strided_slice %1 {offsets = [0, 1], sizes = [8, 1], strides = [1, 1]} : vector<8x128xf32> to vector<8x1xf32>
    %36 = vector.extract_strided_slice %1 {offsets = [0, 5], sizes = [8, 1], strides = [1, 1]} : vector<8x128xf32> to vector<8x1xf32>
    %37 = vector.extract_strided_slice %1 {offsets = [0, 9], sizes = [8, 1], strides = [1, 1]} : vector<8x128xf32> to vector<8x1xf32>
    %38 = vector.extract_strided_slice %1 {offsets = [0, 13], sizes = [8, 1], strides = [1, 1]} : vector<8x128xf32> to vector<8x1xf32>
    %39 = vector.extract_strided_slice %1 {offsets = [0, 17], sizes = [8, 1], strides = [1, 1]} : vector<8x128xf32> to vector<8x1xf32>
    %40 = vector.extract_strided_slice %1 {offsets = [0, 21], sizes = [8, 1], strides = [1, 1]} : vector<8x128xf32> to vector<8x1xf32>
    %41 = vector.broadcast %35 : vector<8x1xf32> to vector<8x128xf32>
    %42 = arith.subf %4, %41 : vector<8x128xf32>
    %43 = vector.broadcast %36 : vector<8x1xf32> to vector<8x128xf32>
    %44 = arith.subf %7, %43 : vector<8x128xf32>
    %45 = vector.broadcast %38 : vector<8x1xf32> to vector<8x128xf32>
    %46 = arith.mulf %45, %42 : vector<8x128xf32>
    %47 = vector.broadcast %39 : vector<8x1xf32> to vector<8x128xf32>
    %48 = arith.mulf %47, %44 : vector<8x128xf32>
    %49 = arith.addf %46, %48 : vector<8x128xf32>
    %50 = arith.mulf %42, %49 : vector<8x128xf32>
    %51 = vector.broadcast %40 : vector<8x1xf32> to vector<8x128xf32>
    %52 = arith.mulf %51, %44 : vector<8x128xf32>
    %53 = arith.mulf %52, %44 : vector<8x128xf32>
    %54 = arith.addf %50, %53 : vector<8x128xf32>
    %55 = math.exp %54 : vector<8x128xf32>
    %56 = vector.broadcast %37 : vector<8x1xf32> to vector<8x128xf32>
    %57 = arith.mulf %55, %56 : vector<8x128xf32>
    %58 = arith.addf %33, %57 : vector<8x128xf32>
    %59 = arith.addf %34, %55 : vector<8x128xf32>
    %60 = vector.extract_strided_slice %1 {offsets = [0, 2], sizes = [8, 1], strides = [1, 1]} : vector<8x128xf32> to vector<8x1xf32>
    %61 = vector.extract_strided_slice %1 {offsets = [0, 6], sizes = [8, 1], strides = [1, 1]} : vector<8x128xf32> to vector<8x1xf32>
    %62 = vector.extract_strided_slice %1 {offsets = [0, 10], sizes = [8, 1], strides = [1, 1]} : vector<8x128xf32> to vector<8x1xf32>
    %63 = vector.extract_strided_slice %1 {offsets = [0, 14], sizes = [8, 1], strides = [1, 1]} : vector<8x128xf32> to vector<8x1xf32>
    %64 = vector.extract_strided_slice %1 {offsets = [0, 18], sizes = [8, 1], strides = [1, 1]} : vector<8x128xf32> to vector<8x1xf32>
    %65 = vector.extract_strided_slice %1 {offsets = [0, 22], sizes = [8, 1], strides = [1, 1]} : vector<8x128xf32> to vector<8x1xf32>
    %66 = vector.broadcast %60 : vector<8x1xf32> to vector<8x128xf32>
    %67 = arith.subf %4, %66 : vector<8x128xf32>
    %68 = vector.broadcast %61 : vector<8x1xf32> to vector<8x128xf32>
    %69 = arith.subf %7, %68 : vector<8x128xf32>
    %70 = vector.broadcast %63 : vector<8x1xf32> to vector<8x128xf32>
    %71 = arith.mulf %70, %67 : vector<8x128xf32>
    %72 = vector.broadcast %64 : vector<8x1xf32> to vector<8x128xf32>
    %73 = arith.mulf %72, %69 : vector<8x128xf32>
    %74 = arith.addf %71, %73 : vector<8x128xf32>
    %75 = arith.mulf %67, %74 : vector<8x128xf32>
    %76 = vector.broadcast %65 : vector<8x1xf32> to vector<8x128xf32>
    %77 = arith.mulf %76, %69 : vector<8x128xf32>
    %78 = arith.mulf %77, %69 : vector<8x128xf32>
    %79 = arith.addf %75, %78 : vector<8x128xf32>
    %80 = math.exp %79 : vector<8x128xf32>
    %81 = vector.broadcast %62 : vector<8x1xf32> to vector<8x128xf32>
    %82 = arith.mulf %80, %81 : vector<8x128xf32>
    %83 = arith.addf %58, %82 : vector<8x128xf32>
    %84 = arith.addf %59, %80 : vector<8x128xf32>
    %85 = vector.extract_strided_slice %1 {offsets = [0, 3], sizes = [8, 1], strides = [1, 1]} : vector<8x128xf32> to vector<8x1xf32>
    %86 = vector.extract_strided_slice %1 {offsets = [0, 7], sizes = [8, 1], strides = [1, 1]} : vector<8x128xf32> to vector<8x1xf32>
    %87 = vector.extract_strided_slice %1 {offsets = [0, 11], sizes = [8, 1], strides = [1, 1]} : vector<8x128xf32> to vector<8x1xf32>
    %88 = vector.extract_strided_slice %1 {offsets = [0, 15], sizes = [8, 1], strides = [1, 1]} : vector<8x128xf32> to vector<8x1xf32>
    %89 = vector.extract_strided_slice %1 {offsets = [0, 19], sizes = [8, 1], strides = [1, 1]} : vector<8x128xf32> to vector<8x1xf32>
    %90 = vector.extract_strided_slice %1 {offsets = [0, 23], sizes = [8, 1], strides = [1, 1]} : vector<8x128xf32> to vector<8x1xf32>
    %91 = vector.broadcast %85 : vector<8x1xf32> to vector<8x128xf32>
    %92 = arith.subf %4, %91 : vector<8x128xf32>
    %93 = vector.broadcast %86 : vector<8x1xf32> to vector<8x128xf32>
    %94 = arith.subf %7, %93 : vector<8x128xf32>
    %95 = vector.broadcast %88 : vector<8x1xf32> to vector<8x128xf32>
    %96 = arith.mulf %95, %92 : vector<8x128xf32>
    %97 = vector.broadcast %89 : vector<8x1xf32> to vector<8x128xf32>
    %98 = arith.mulf %97, %94 : vector<8x128xf32>
    %99 = arith.addf %96, %98 : vector<8x128xf32>
    %100 = arith.mulf %92, %99 : vector<8x128xf32>
    %101 = vector.broadcast %90 : vector<8x1xf32> to vector<8x128xf32>
    %102 = arith.mulf %101, %94 : vector<8x128xf32>
    %103 = arith.mulf %102, %94 : vector<8x128xf32>
    %104 = arith.addf %100, %103 : vector<8x128xf32>
    %105 = math.exp %104 : vector<8x128xf32>
    %106 = vector.broadcast %87 : vector<8x1xf32> to vector<8x128xf32>
    %107 = arith.mulf %105, %106 : vector<8x128xf32>
    %108 = arith.addf %83, %107 : vector<8x128xf32>
    %109 = arith.addf %84, %105 : vector<8x128xf32>
    %cst_4 = arith.constant 1.000000e-07 : f32
    %110 = vector.broadcast %cst_4 : f32 to vector<8x128xf32>
    %111 = arith.maximumf %110, %109 : vector<8x128xf32>
    %112 = tpu.reciprocal %111 {approx = true} : vector<8x128xf32> -> vector<8x128xf32>
    %113 = arith.mulf %111, %112 : vector<8x128xf32>
    %cst_5 = arith.constant 2.000000e+00 : f32
    %114 = vector.broadcast %cst_5 : f32 to vector<8x128xf32>
    %115 = arith.subf %114, %113 : vector<8x128xf32>
    %116 = arith.mulf %112, %115 : vector<8x128xf32>
    %117 = arith.mulf %108, %116 : vector<8x128xf32>
    %cst_6 = arith.constant 0.000000e+00 : f32
    %cst_7 = arith.constant 1.000000e+00 : f32
    %118 = vector.broadcast %cst_6 : f32 to vector<8x128xf32>
    %119 = arith.maximumf %118, %117 : vector<8x128xf32>
    %120 = vector.broadcast %cst_7 : f32 to vector<8x128xf32>
    %121 = arith.minimumf %120, %119 : vector<8x128xf32>
    %c0_8 = arith.constant 0 : index
    %c0_9 = arith.constant 0 : index
    %122 = vector.load %arg4[%c0_8, %c0_9] : memref<8x128xf32, #tpu.memory_space<vmem>>, vector<8x128xf32>
    tpu.vector_store %arg4[%c0_8, %c0_9], %121 {strides = array<i32>} : memref<8x128xf32, #tpu.memory_space<vmem>>, vector<8x128xf32>,
    return
  }
  func.func @transform_0(%arg0: i32, %arg1: i32) -> (i32, i32) {
    %c0_i32 = arith.constant 0 : i32
    %c0_i32_0 = arith.constant 0 : i32
    return %c0_i32, %arg0 : i32, i32
  }
  func.func @transform_1(%arg0: i32, %arg1: i32) -> (i32, i32) {
    %c0_i32 = arith.constant 0 : i32
    %c0_i32_0 = arith.constant 0 : i32
    return %arg1, %c0_i32 : i32, i32
  }
  func.func @transform_2(%arg0: i32, %arg1: i32) -> (i32, i32) {
    %c0_i32 = arith.constant 0 : i32
    return %arg1, %arg0 : i32, i32
  }
}

</mosaic_0001>

<bundles_post_ra>
// kernel: tpu_custom_call.1
= control target key start
LH: loop header
LB: loop body
LE: loop exit
PB: predicated region body
PF: predicated region fallthrough
CT: control target
= control target key end

     0   :  { %7 = vsyncpa [#allocation3], 0  ;;  %s1053_s0 = inlined_call_operand.hbm [shape: f32[2,256], index: 0, kind: input, shape index: {}]   ;;  %s1054_s1 = inlined_call_operand.hbm [shape: f32[8,128], index: 1, kind: input, shape index: {}]   ;;  %s1055_s2 = inlined_call_operand.hbm [shape: f32[8,256], index: 2, kind: output, shape index: {}]  }
   0x1   :  { %9 = vsyncpa [#allocation3 + $0x1], 0 }
   0x2   :  { %10 = vsyncpa [#allocation6], 0 }
   0x3   :  { %11 = vsyncpa [#allocation4], 0 }
   0x4   :  { %13 = vsyncpa [#allocation4 + $0x1], 0  ;;  %s807_s9 = smov 0   ;;  %s809_s10 = smov 0  }
   0x5   :  { %s811_s11 = smov 0   ;;  %s813_s12 = smov 0  }
   0x6   :  { %s815_s13 = smov 0   ;;  %s817_s14 = smov 0  }
   0x7 LB: > { %s473_s15 = sadd.s32 4294967295, %s763_s14   ;;  %s474_s16 = sadd.s32 4294967294, %s763_s14   ;;  %s763_s14 = sphi %s817_s14, %s19_s14   ;;  %s759_s13 = sphi %s815_s13, %s1080_s13   ;;  %s755_s12 = sphi %s813_s12, %s1079_s12   ;;  %s751_s11 = sphi %s811_s11, %s1078_s11   ;;  %s747_s10 = sphi %s809_s10, %s1077_s10   ;;  %s743_s9 = sphi %s807_s9, %s1076_s9  }
   0x8   : > { %p51_p0 = scmp.ne.s32.totalorder %s747_s10, %s743_s9  ;;  %p841_p1 = scmp.eq.s32.totalorder %s473_s15, 0 }
   0x9   : > { %p845_p2 = scmp.eq.s32.totalorder %s473_s15, 1  ;;  %p109_p3 = scmp.eq.s32.totalorder %s474_s16, 1 }
   0xa   : > { %s1060_s17 = scalar_select %p841_p1, 1, 0 }
   0xb   : > { %s1061_s18 = scalar_select %p845_p2, 1, 0 }
   0xc   : > { %p851_p4 = por %p841_p1, %p51_p0  ;;  %p475_p5 = scmp.ge.s32.totalorder %s763_s14, 1 }
   0xd   : > { %p856_p6 = por %p109_p3, %p51_p0  ;;  %p116_p7 = scmp.lt.s32.totalorder %s763_s14, 3 }
   0xe   : > { %s1062_s19 = scalar_select %p851_p4, 1, 0 }
   0xf   : > { %s1063_s20 = scalar_select %p856_p6, 1, 0 }
  0x10   : > { %p861_p8 = pnand %p475_p5, %p116_p7  ;;  %s765_s22 = smov [#allocation5]  }
  0x11   : > { %s131_s23 = sshll.u32 %s765_s22, 4  ;;  %s31_s25 = sadd.s32 1, %s759_s13  ;;  %s132_s23 = int_to_ptr.vmem [resolvable:$true] %s131_s23 }
  0x12   : > { %s1064_s21 = scalar_select %p861_p8, 1, 0 }
  0x13   : > { %p496_p10 = pneg %p861_p8  ;;  %s38_s26 = sadd.s32 1, %s751_s11 }
  0x14   : > { %p876_p12 = scmp.ge.s32.totalorder %s31_s25, 2  ;;  %s619_s30 = scalar_lea.hbm %s1054_s1, 128 }
  0x15   : > { %p870_p11 = pnand %p496_p10, %p841_p1  ;;  %p620_p13 = scmp.ne.s32.totalorder %s1054_s1, %s619_s30 }
  0x16   : > { %s1066_s27 = scalar_select %p876_p12, 1, 0 }
  0x17   : > { %p621_p0 = pneg %p870_p11  ;;  %p626_p7 = scmp.lt.u32.totalorder %s619_s30, %s1054_s1 }
  0x19   : > { %p622_p3 = pnand %p621_p0, %p620_p13 }
  0x1b   : > { %p623_p5 = pneg %p622_p3 }
  0x1d   : > { %p628_p10 = pnand %p626_p7, %p623_p5 }
  0x1f   : > { %631 = shalt.err (!%p628_p10)
}
  0x20   : > { %s632_s7 = scalar_lea.vmem %s132_s23, 128  ;;  %p640_p4 = scmp.lt.s32.totalorder %s132_s23, %s132_s23 }
  0x21   : > { %p633_p9 = scmp.ne.s32.totalorder %s132_s23, %s632_s7  ;;  %p641_p8 = scmp.lt.s32.totalorder %s632_s7, %s632_s7 }
  0x23   : > { %p635_p6 = pnand %p633_p9, %p621_p0  ;;  %p642_p2 = por %p641_p8, %p640_p4 }
  0x25   : > { %p636_p1 = pneg %p635_p6 }
  0x27   : > { %p643_p12 = pnand %p642_p2, %p636_p1 }
  0x29   : > { %646 = shalt.err (!%p643_p12)
}
  0x2a   : > { %499 = dma.hbm_to_vmem [thread:$0]  (!%p870_p11), %s1054_s1, 128, %s132_s23, [#allocation6]  }
  0x2b   : > { %p1067_p4 = scmp.ne.s32.totalorder %s1066_s27, 0  ;;  %p45_p1 = scmp.ne.s32.totalorder %s751_s11, %s747_s10 }
  0x2c   : > { %p46_p2 = scmp.eq.s32.totalorder %s763_s14, 0  ;;  %p509_p6 = scmp.lt.s32.totalorder %s763_s14, 2 }
  0x2d   : > { %s1082_s25 = smov (%p1067_p4, %s31_s25), 0  ;;  %p1068_p12 = scmp.ne.s32.totalorder %s1061_s18, 0 }
  0x2e   : > { %s35_s16 = ssub.s32 %s759_s13, %s1082_s25  ;;  %p47_p9 = por %p46_p2, %p45_p1 }
  0x2f   : > { %p36_p8 = scmp.eq.s32.totalorder %s35_s16, 0  ;;  %p908_p13 = por %p1068_p12, %p45_p1 }
  0x30   : > { %s142_s24 = sand.u32 1, %s751_s11   ;;  %s479_s27 = sshll.u32 %s759_s13, 5 }
  0x31   : > { %s916_s28 = scalar_select %p36_p8, %s751_s11, %s38_s26  }
  0x32   : > { %s478_s23 = sshll.u32 %s142_s24, 1  ;;  %s922_s3 = scalar_lea.hbm %s1053_s0, %s479_s27 }
  0x33   : > { %s146_s18 = scalar_lea.vmem [#allocation2], %s478_s23  ;;  %p926_p11 = pnand %p509_p6, %p47_p9 }
  0x34   : > { %s153_s4 = sshll.u32 %s146_s18, 4  ;;  %s143_s26 = scalar_lea.sflag [#allocation3], %s142_s24  ;;  %s924_s4 = int_to_ptr.vmem [resolvable:$true] %s153_s4 }
  0x35   : > { %s647_s6 = scalar_lea.hbm %s922_s3, 32  ;;  %p649_p3 = pneg %p926_p11 }
  0x36   : > { %p648_p0 = scmp.ne.s32.totalorder %s922_s3, %s647_s6  ;;  %s652_s15 = scalar_lea.hbm %s1053_s0, 64 }
  0x37   : > { %p653_p10 = scmp.lt.u32.totalorder %s922_s3, %s1053_s0  ;;  %p654_p4 = scmp.lt.u32.totalorder %s652_s15, %s647_s6 }
  0x38   : > { %p650_p5 = pnand %p649_p3, %p648_p0  ;;  %p656_p2 = scmp.lt.u32.totalorder %s647_s6, %s922_s3 }
  0x39   : > { %p655_p1 = por %p654_p4, %p653_p10 }
  0x3a   : > { %p651_p7 = pneg %p650_p5 }
  0x3b   : > { %p657_p6 = por %p656_p2, %p655_p1 }
  0x3d   : > { %p658_p8 = pnand %p657_p6, %p651_p7 }
  0x3f   : > { %661 = shalt.err (!%p658_p8)
}
  0x40   : > { %s662_s24 = scalar_lea.vmem %s924_s4, 32  ;;  %s766_s27 = smov [#allocation2]  }
  0x41   : > { %p663_p9 = scmp.ne.s32.totalorder %s924_s4, %s662_s24  ;;  %s667_s29 = sshll.u32 %s766_s27, 4  ;;  %s668_s29 = int_to_ptr.vmem [resolvable:$false] %s667_s29 }
  0x42   : > { %s669_s30 = scalar_lea.vmem %s668_s29, 64  ;;  %p670_p5 = scmp.lt.s32.totalorder %s924_s4, %s668_s29 }
  0x43   : > { %p665_p12 = pnand %p663_p9, %p649_p3  ;;  %p671_p10 = scmp.lt.s32.totalorder %s669_s30, %s662_s24 }
  0x45   : > { %p666_p0 = pneg %p665_p12  ;;  %p672_p4 = por %p671_p10, %p670_p5 }
  0x47   : > { %p673_p1 = pnand %p672_p4, %p666_p0 }
  0x49   : > { %676 = shalt.err (!%p673_p1)
}
  0x4a   : > { %503 = dma.hbm_to_vmem [thread:$0]  (!%p926_p11), %s922_s3, 32, %s924_s4, %s143_s26  }
  0x4b   : > { %p1071_p7 = scmp.ne.s32.totalorder %s1064_s21, 0 }
  0x4c   : > { %s958_s18 = sand.u32 (!%p1071_p7), 1, %s747_s10   ;;  %p1072_p3 = scmp.ne.s32.totalorder (!%p1071_p7), %s1062_s19, 0 }
  0x4d   : > { %162 = sbr.rel (%p1071_p7) target bundleno = 338 (0x152), region = 28  ;;  %s481_s6 = sshll.u32 (!%p1071_p7), %s958_s18, 1 }
  0x4e   : > { %s165_s7 = scalar_lea.sflag (!%p1071_p7), [#allocation3], %s958_s18  ;;  %s962_s8 = scalar_lea.vmem (!%p1071_p7), [#allocation2], %s481_s6 }
  0x54   : > { %730 = dma.done.wait (%p1072_p3), %s165_s7, 32  }
  0x55   : > { %732 = vsyncadd (%p1072_p3), %s165_s7, 4294967264  ;;  %p1073_p11 = scmp.ne.s32.totalorder %s1060_s17, 0 }
  0x57   : > { %734 = dma.done.wait (%p1073_p11), [#allocation6], 128  }
  0x58   : > { %736 = vsyncadd (%p1073_p11), [#allocation6], 4294967168  ;;  %v767_v0 = vmov 1   ;;  %v768_v1 = vmov 0   ;;  %v972_v2 = vld [vmem:[#allocation5] sm:$0xff]  ;;  %v769_v3 = vmov 5   ;;  %v195_v32 = vlaneseq }
  0x59   : > { %587 = vset.pattern.permute.xlu1 %v767_v0  ;;  %585 = vset.pattern.permute.xlu0 %v768_v1  ;;  %v770_v4 = vmov 4   ;;  %v771_v5 = vmov 12   ;;  %v772_v6 = vmov 16   ;;  %v773_v7 = vmov 13   ;;  %v193_v40 = vld [vmem:[%s962_s8] sm:$0x3] }
  0x5a   : > { %243 = vperm.xlu1 %587, %v972_v2   ;;  %205 = vperm.xlu0 %585, %v972_v2   ;;  %v774_v8 = vmov 2   ;;  %v775_v9 = vmov 17   ;;  %v776_v10 = vmov 21   ;;  %v777_v11 = vmov 6   ;;  %s483_s17 = sshll.u32 %s958_s18, 3  ;;  %s485_s19 = sshll.u32 %s755_s12, 7 }
  0x5b   : > { %v778_v12 = vmov 3   ;;  %v779_v13 = vmov 20   ;;  %v780_v14 = vmov 15   ;;  %v781_v15 = vmov 14   ;;  %s192_s21 = scalar_lea.vmem [#allocation7], %s483_s17  ;;  %s1004_s26 = scalar_lea.hbm %s1055_s2, %s485_s19 }
  0x5c   : > { %v782_v16 = vmov 8   ;;  %v783_v17 = vmov 18   ;;  %v784_v18 = vmov 11   ;;  %v785_v19 = vmov 7   ;;  %s381_s3 = sshll.u32 %s192_s21, 4  ;;  %s366_s15 = scalar_lea.sflag [#allocation4], %s958_s18  ;;  %s1006_s3 = int_to_ptr.vmem [resolvable:$true] %s381_s3 }
  0x5d   : > { %v786_v20 = vmov 22   ;;  %v787_v21 = vmov 19   ;;  %v788_v22 = vmov 23   ;;  %v789_v23 = vmov 9   ;;  %s677_s16 = scalar_lea.vmem %s1006_s3, 128  ;;  %s791_s12 = smov [#allocation7]  }
  0x5e   : > { %588 = vset.pattern.permute.xlu1 %v769_v3  ;;  %586 = vset.pattern.permute.xlu0 %v770_v4  ;;  %v790_v24 = vmov 10   ;;  %v196_v35 = vshrl.u32 %v195_v32, 7  ;;  %p678_p2 = scmp.ne.s32.totalorder %s1006_s3, %s677_s16  ;;  %s681_s23 = sshll.u32 %s791_s12, 4  ;;  %s682_s23 = int_to_ptr.vmem [resolvable:$false] %s681_s23 }
  0x5f   : > { %248 = vperm.xlu1 %588, %v972_v2   ;;  %210 = vperm.xlu0 %586, %v972_v2   ;;  %s683_s24 = scalar_lea.vmem %s682_s23, 256  ;;  %p684_p9 = scmp.lt.s32.totalorder %s1006_s3, %s682_s23 }
  0x60   : > { %v201_v36 = vsub.s32 1, %v196_v35  ;;  %v197_v38 = vsub.s32 0, %v196_v35  ;;  %p679_p6 = pnand %p678_p2, %p908_p13  ;;  %p685_p12 = scmp.lt.s32.totalorder %s683_s24, %s677_s16 }
  0x62   : > { %v202_v41 = vrot.slane %v193_v40, %v201_v36  ;;  %v198_v43 = vrot.slane %v193_v40, %v197_v38  ;;  %p680_p8 = pneg %p679_p6  ;;  %p686_p0 = por %p685_p12, %p684_p9 }
  0x63   : > { %589 = vset.pattern.permute.xlu1 %v771_v5  ;;  %590 = vset.pattern.permute.xlu0 %v772_v6 }
  0x64   : > { %215 = vperm.xlu1 %589, %v972_v2   ;;  %220 = vperm.xlu0 %590, %v972_v2   ;;  %p687_p5 = pnand %p686_p0, %p680_p8 }
  0x68   : > { %591 = vset.pattern.permute.xlu1 %v773_v7  ;;  %593 = vset.pattern.permute.xlu0 %v774_v8 }
  0x69   : > { %253 = vperm.xlu1 %591, %v972_v2   ;;  %281 = vperm.xlu0 %593, %v972_v2  }
  0x6d   : > { %592 = vset.pattern.permute.xlu1 %v775_v9  ;;  %596 = vset.pattern.permute.xlu0 %v776_v10 }
  0x6e   : > { %258 = vperm.xlu1 %592, %v972_v2   ;;  %265 = vperm.xlu0 %596, %v972_v2  }
  0x72   : > { %594 = vset.pattern.permute.xlu1 %v777_v11  ;;  %599 = vset.pattern.permute.xlu0 %v778_v12 }
  0x73   : > { %286 = vperm.xlu1 %594, %v972_v2   ;;  %319 = vperm.xlu0 %599, %v972_v2  }
  0x77   : > { %595 = vset.pattern.permute.xlu1 %v779_v13  ;;  %602 = vset.pattern.permute.xlu0 %v780_v14 }
  0x78   : > { %227 = vperm.xlu1 %595, %v972_v2   ;;  %329 = vperm.xlu0 %602, %v972_v2  }
  0x7c   : > { %597 = vset.pattern.permute.xlu1 %v781_v15  ;;  %605 = vset.pattern.permute.xlu0 %v782_v16 }
  0x7d   : > { %291 = vperm.xlu1 %597, %v972_v2   ;;  %236 = vperm.xlu0 %605, %v972_v2  }
  0x81   : > { %598 = vset.pattern.permute.xlu1 %v783_v17  ;;  %608 = vset.pattern.permute.xlu0 %v784_v18 }
  0x82   : > { %296 = vperm.xlu1 %598, %v972_v2   ;;  %350 = vperm.xlu0 %608, %v972_v2  }
  0x86   : > { %600 = vset.pattern.permute.xlu1 %v785_v19 }
  0x87   : > { %324 = vperm.xlu1 %600, %v972_v2  }
  0x8b   : > { %601 = vset.pattern.permute.xlu1 %v786_v20 }
  0x8c   : > { %303 = vperm.xlu1 %601, %v972_v2  }
  0x90   : > { %603 = vset.pattern.permute.xlu1 %v787_v21 }
  0x91   : > { %334 = vperm.xlu1 %603, %v972_v2  }
  0x95   : > { %604 = vset.pattern.permute.xlu1 %v788_v22 }
  0x96   : > { %341 = vperm.xlu1 %604, %v972_v2  }
  0x9a   : > { %606 = vset.pattern.permute.xlu1 %v789_v23 }
  0x9b   : > { %274 = vperm.xlu1 %606, %v972_v2  }
  0x9f   : > { %607 = vset.pattern.permute.xlu1 %v790_v24 }
  0xa0   : > { %312 = vperm.xlu1 %607, %v972_v2  }
  0xd9   : > { %v244_v25 = vpop.permute.xlu1 %243  ;;  %v206_v30 = vpop.permute.xlu0 %205 }
  0xda   : > { %v208_v45 = vsub.f32 %v198_v43, %v206_v30  ;;  %v246_v48 = vsub.f32 %v198_v43, %v244_v25 }
  0xde   : > { %v249_v26 = vpop.permute.xlu1 %248  ;;  %v211_v33 = vpop.permute.xlu0 %210 }
  0xdf   : > { %v213_v46 = vsub.f32 %v202_v41, %v211_v33  ;;  %v251_v47 = vsub.f32 %v202_v41, %v249_v26 }
  0xe3   : > { %v216_v27 = vpop.permute.xlu1 %215  ;;  %v221_v37 = vpop.permute.xlu0 %220 }
  0xe4   : > { %v218_v51 = vmul.f32 %v216_v27, %v208_v45  ;;  %v223_v52 = vmul.f32 %v221_v37, %v213_v46 }
  0xe6   : > { %v224_v61 = vadd.f32 %v223_v52, %v218_v51 }
  0xe8   : > { %v254_v28 = vpop.permute.xlu1 %253  ;;  %v282_v42 = vpop.permute.xlu0 %281  ;;  %v225_v6 = vmul.f32 %v224_v61, %v208_v45 }
  0xe9   : > { %v284_v53 = vsub.f32 %v198_v43, %v282_v42  ;;  %v256_v56 = vmul.f32 %v254_v28, %v246_v48 }
  0xed   : > { %v259_v29 = vpop.permute.xlu1 %258  ;;  %v266_v50 = vpop.permute.xlu0 %265 }
  0xee   : > { %v261_v49 = vmul.f32 %v259_v29, %v251_v47  ;;  %v268_v63 = vmul.f32 %v266_v50, %v251_v47 }
  0xf0   : > { %v262_v59 = vadd.f32 %v261_v49, %v256_v56  ;;  %v269_v8 = vmul.f32 %v268_v63, %v251_v47 }
  0xf2   : > { %v287_v31 = vpop.permute.xlu1 %286  ;;  %v320_v60 = vpop.permute.xlu0 %319  ;;  %v263_v5 = vmul.f32 %v262_v59, %v246_v48 }
  0xf3   : > { %v289_v54 = vsub.f32 %v202_v41, %v287_v31  ;;  %v322_v3 = vsub.f32 %v198_v43, %v320_v60 }
  0xf4   : > { %v270_v15 = vadd.f32 %v269_v8, %v263_v5 }
  0xf6   : > { %v271_v20 = vmul.f32 1.442695, %v270_v15 }
  0xf7   : > { %v228_v34 = vpop.permute.xlu1 %227  ;;  %v330_v10 = vpop.permute.xlu0 %329 }
  0xf8   : > { %v230_v57 = vmul.f32 %v228_v34, %v213_v46  ;;  %v332_v13 = vmul.f32 %v330_v10, %v322_v3 }
  0xfa   : > { %v231_v1 = vmul.f32 %v230_v57, %v213_v46 }
  0xfc   : > { %v292_v39 = vpop.permute.xlu1 %291  ;;  %v232_v11 = vadd.f32 %v231_v1, %v225_v6  ;;  %v237_v37 = vpop.permute.xlu0 %236 }
  0xfd   : > { %v294_v62 = vmul.f32 %v292_v39, %v284_v53 }
  0xfe   : > { %v233_v18 = vmul.f32 1.442695, %v232_v11 }
 0x100   : > { %609 = vpow2.f32 %v233_v18 }
 0x101   : > { %v297_v44 = vpop.permute.xlu1 %296  ;;  %611 = vpow2.f32 %v271_v20  ;;  %v351_v40 = vpop.permute.xlu0 %350 }
 0x102   : > { %v299_v58 = vmul.f32 %v297_v44, %v289_v54 }
 0x104   : > { %v300_v2 = vadd.f32 %v299_v58, %v294_v62 }
 0x106   : > { %v325_v55 = vpop.permute.xlu1 %324  ;;  %v301_v12 = vmul.f32 %v300_v2, %v284_v53 }
 0x107   : > { %v327_v9 = vsub.f32 %v202_v41, %v325_v55 }
 0x10a   : > { %v610_v28 = vpop.eup %609 }
 0x10b   : > { %v304_v0 = vpop.permute.xlu1 %303  ;;  %v612_v29 = vpop.eup %611  ;;  %v239_v41 = vmul.f32 %v610_v28, %v237_v37 }
 0x10c   : > { %v306_v4 = vmul.f32 %v304_v0, %v289_v54  ;;  %v279_v31 = vadd.f32 %v612_v29, %v610_v28 }
 0x10e   : > { %v307_v7 = vmul.f32 %v306_v4, %v289_v54 }
 0x110   : > { %v335_v14 = vpop.permute.xlu1 %334  ;;  %v308_v17 = vadd.f32 %v307_v7, %v301_v12 }
 0x111   : > { %v337_v16 = vmul.f32 %v335_v14, %v327_v9 }
 0x112   : > { %v309_v22 = vmul.f32 1.442695, %v308_v17 }
 0x113   : > { %v338_v19 = vadd.f32 %v337_v16, %v332_v13 }
 0x114   : > { %613 = vpow2.f32 %v309_v22 }
 0x115   : > { %v342_v21 = vpop.permute.xlu1 %341  ;;  %v339_v24 = vmul.f32 %v338_v19, %v322_v3 }
 0x116   : > { %v344_v23 = vmul.f32 %v342_v21, %v327_v9 }
 0x118   : > { %v345_v25 = vmul.f32 %v344_v23, %v327_v9 }
 0x11a   : > { %v346_v26 = vadd.f32 %v345_v25, %v339_v24  ;;  %v275_v36 = vpop.permute.xlu1 %274 }
 0x11b   : > { %v277_v39 = vmul.f32 %v612_v29, %v275_v36 }
 0x11c   : > { %v347_v27 = vmul.f32 1.442695, %v346_v26 }
 0x11d   : > { %v278_v44 = vadd.f32 %v277_v39, %v239_v41 }
 0x11e   : > { %615 = vpow2.f32 %v347_v27  ;;  %v614_v30 = vpop.eup %613 }
 0x11f   : > { %v317_v32 = vadd.f32 %v614_v30, %v279_v31  ;;  %v313_v38 = vpop.permute.xlu1 %312 }
 0x120   : > { %v315_v42 = vmul.f32 %v614_v30, %v313_v38 }
 0x122   : > { %v316_v47 = vadd.f32 %v315_v42, %v278_v44 }
 0x128   : > { %v616_v33 = vpop.eup %615 }
 0x129   : > { %v355_v34 = vadd.f32 %v616_v33, %v317_v32  ;;  %v353_v45 = vmul.f32 %v616_v33, %v351_v40 }
 0x12b   : > { %v356_v35 = vmax.f32 %v355_v34, 1e-07  ;;  %v354_v49 = vadd.f32 %v353_v45, %v316_v47 }
 0x12d   : > { %617 = vrcp.f32 %v356_v35 }
 0x137   : > { %v618_v43 = vpop.eup %617 }
 0x138   : > { %v358_v46 = vmul.f32 %v618_v43, %v356_v35 }
 0x13a   : > { %v359_v48 = vsub.f32 2.0, %v358_v46 }
 0x13c   : > { %v360_v50 = vmul.f32 %v618_v43, %v359_v48 }
 0x13e   : > { %v361_v51 = vmul.f32 %v360_v50, %v354_v49 }
 0x140   : > { %v362_v52 = vmax.f32 %v361_v51, 0.0 }
 0x142   : > { %v363_v53 = vmin.f32 %v362_v52, 1.0 }
 0x144   : > { %364 = vst [vmem:[%s192_s21] sm:$0xff] %v363_v53 }
 0x145   : > { %690 = shalt.err (!%p687_p5)
}
 0x146   : > { %s691_s27 = scalar_lea.hbm %s1004_s26, 128  ;;  %s695_s18 = scalar_lea.hbm %s1055_s2, 256 }
 0x147   : > { %p692_p10 = scmp.ne.s32.totalorder %s1004_s26, %s691_s27  ;;  %p696_p7 = scmp.lt.u32.totalorder %s1004_s26, %s1055_s2 }
 0x148   : > { %p697_p3 = scmp.lt.u32.totalorder %s695_s18, %s691_s27  ;;  %p699_p2 = scmp.lt.u32.totalorder %s691_s27, %s1004_s26 }
 0x149   : > { %p693_p4 = pnand %p692_p10, %p908_p13 }
 0x14a   : > { %p698_p11 = por %p697_p3, %p696_p7 }
 0x14b   : > { %p694_p1 = pneg %p693_p4 }
 0x14c   : > { %p700_p6 = por %p699_p2, %p698_p11 }
 0x14e   : > { %p701_p8 = pnand %p700_p6, %p694_p1 }
 0x150   : > { %704 = shalt.err (!%p701_p8)
}
 0x151   : > { %494 = dma.vmem_to_hbm [thread:$0]  (%p908_p13), %s1006_s3, 128, %s1004_s26, %s366_s15  }
 0x152 PF: > { %s393_s8 = sand.u32 1, %s743_s9   ;;  %p1074_p9 = scmp.ne.s32.totalorder %s1063_s20, 0 }
 0x153   : > { %p1075_p12 = scmp.ge.s32.totalorder %s763_s14, 2  ;;  %s394_s17 = scalar_lea.sflag [#allocation4], %s393_s8 }
 0x155   : > { %p505_p0 = pnand %p1075_p12, %p1074_p9 }
 0x157   : > { %738 = dma.done.wait (!%p505_p0), %s394_s17, 128  }
 0x158   : > { %740 = vsyncadd (!%p505_p0), %s394_s17, 4294967168  ;;  %s19_s14 = sadd.s32 1, %s763_s14   ;;  %s1076_s9 = smov %s747_s10 }
 0x159   : > { %p16_p5 = scmp.ge.s32.totalorder %s19_s14, 4   ;;  %s1077_s10 = smov %s751_s11 }
 0x15a   : > { %s1078_s11 = smov %s916_s28  ;;  %s1079_s12 = smov %s759_s13 }
 0x15b   : > { %s1080_s13 = smov %s1082_s25  ;;  %18 = sbr.rel (!%p16_p5) target bundleno = 7 (0x7), region = 78 }
 0x162   :  { %399 = vsyncpa [#allocation3], 1 }
 0x163   :  { %401 = vsyncpa [#allocation3 + $0x1], 1 }
 0x164   :  { %402 = vsyncpa [#allocation6], 1 }
 0x165   :  { %403 = vsyncpa [#allocation4], 1 }
 0x166   :  { %405 = vsyncpa [#allocation4 + $0x1], 1 }

</bundles_post_ra>
